<compile_context>
chip_gen: v7x
topology: tpu7x:2x2x1
jax: 0.10.0
libtpu: 0.0.40
codegen_flags: <defaults>
</compile_context>

<pallas_src>
import functools

import jax
import jax.numpy as jnp
from jax.experimental import pallas as pl
from jax.experimental.pallas import tpu as pltpu

EPS = 1e-5                              # PyTorch BatchNorm1d default eps
_VMEM_LIMIT = 48 * 1024 * 1024          # < 64 MiB physical per TC on v7x
_WS_BUDGET = 20 * 1024 * 1024           # per-step working-set target


def _pick_batch_tile(n, c_in, c_out, l, k, itemsize):
    """Largest batch tile whose working set fits and that keeps >=2 grid steps."""
    def working_set(bt):
        x_tile = bt * c_in * l * itemsize       # double-buffered input tile
        out_tile = bt * c_out * l * 4           # double-buffered f32 output tile
        rhs = k * c_in * bt * l * itemsize      # im2col scratch
        w2 = c_out * k * c_in * itemsize        # resident weights
        return 2 * (x_tile + out_tile) + rhs + w2

    for bt in (8, 4, 2, 1):
        if n % bt != 0:
            continue
        if n // bt < 2 and not (n == bt == 1):  # keep >=2 steps (v7x 2 TCs)
            continue
        if working_set(bt) <= _WS_BUDGET:
            return bt
    return 1


def _fill_im2col(x_ref, rhs_ref, *, k, l, c_in, b_tile, pad_left):
    """Build the im2col RHS for a whole batch tile, halo built in-kernel.

    x_ref:   (b_tile, C_in, L)        unpadded input tile (VMEM)
    rhs_ref: (K*C_in, b_tile*L)       scratch; column bb*L+p, row kk*C_in+c
                                      holds x[bb, c, p + kk - pad_left]
                                      (zero outside [0, L)).
    All slice bounds are static; edge strips are zero-filled explicitly so no
    reliance on scratch initialization (safe under megacore 'parallel').
    """
    for bb in range(b_tile):
        col0 = bb * l
        for kk in range(k):
            s = kk - pad_left                   # static shift of this tap
            r0 = kk * c_in
            p_lo = min(max(0, -s), l)           # valid output positions
            p_hi = max(min(l, l - s), p_lo)
            if p_hi > p_lo:
                rhs_ref[r0:r0 + c_in, col0 + p_lo:col0 + p_hi] = (
                    x_ref[bb, :, p_lo + s:p_hi + s])
            if p_lo > 0:                        # left halo -> zeros
                rhs_ref[r0:r0 + c_in, col0:col0 + p_lo] = jnp.zeros(
                    (c_in, p_lo), dtype=rhs_ref.dtype)
            if p_hi < l:                        # right halo -> zeros
                rhs_ref[r0:r0 + c_in, col0 + p_hi:col0 + l] = jnp.zeros(
                    (c_in, l - p_hi), dtype=rhs_ref.dtype)


def conv_stats_kernel(x_ref, w_ref, mean_ref, m2_ref, rhs_ref,
                      *, k, l, c_in, b_tile, pad_left):
    """Pass 1: conv (one batched MXU matmul) -> streaming per-channel BN stats.

    mean_ref / m2_ref: (C_out, 1) resident accumulators (constant out index),
    combined across grid steps with Chan's parallel-Welford formula and written
    back to HBM exactly once at the end of the grid.
    """
    pid = pl.program_id(0)

    @pl.when(pid == 0)
    def _():
        mean_ref[...] = jnp.zeros_like(mean_ref)
        m2_ref[...] = jnp.zeros_like(m2_ref)

    _fill_im2col(x_ref, rhs_ref, k=k, l=l, c_in=c_in, b_tile=b_tile,
                 pad_left=pad_left)
    # One MXU matmul per grid step: contraction K*C_in, N-dim b_tile*L.
    acc = jnp.dot(w_ref[...], rhs_ref[...],
                  preferred_element_type=jnp.float32)      # (C_out, b_tile*L)

    m = float(b_tile * l)                                   # samples this tile
    t_mean = jnp.sum(acc, axis=-1, keepdims=True) * (1.0 / m)
    d = acc - t_mean
    t_m2 = jnp.sum(d * d, axis=-1, keepdims=True)

    # Chan parallel combine of (n_a, mean_a, M2_a) with this tile (m, ., .).
    n_a = pid.astype(jnp.float32) * m
    n_tot = n_a + m
    delta = t_mean - mean_ref[...]
    mean_ref[...] = mean_ref[...] + delta * (m / n_tot)
    m2_ref[...] = m2_ref[...] + t_m2 + delta * delta * (n_a * m / n_tot)


def conv_bn_act_kernel(x_ref, w_ref, scale_ref, shift_ref, o_ref, rhs_ref,
                       *, k, l, c_in, b_tile, pad_left):
    """Pass 2: recompute conv, fused BN affine + SiLU, store final output."""
    _fill_im2col(x_ref, rhs_ref, k=k, l=l, c_in=c_in, b_tile=b_tile,
                 pad_left=pad_left)
    acc = jnp.dot(w_ref[...], rhs_ref[...],
                  preferred_element_type=jnp.float32)      # (C_out, b_tile*L)
    # Vectorized over the whole block; (C_out, 1) broadcasts hoisted once.
    y = acc * scale_ref[...] + shift_ref[...]
    z = y * jax.nn.sigmoid(y)                               # SiLU
    for bb in range(b_tile):                                # static lane slices
        o_ref[bb] = z[:, bb * l:(bb + 1) * l].astype(o_ref.dtype)


def local_block(x, w, gamma, beta, *, compute_dtype=jnp.bfloat16):
    """Conv1d('same', bias=False) -> BatchNorm1d (batch stats) -> SiLU.

    x: (N, C_in, L) f32, w: (C_out, C_in, K) f32, gamma/beta: (C_out,) f32.
    compute_dtype only affects the MXU inputs (x, weights); accumulation, BN
    statistics and all elementwise math stay in f32.
    """
    n, c_in, l = x.shape
    c_out, c_in_w, k = w.shape
    assert c_in == c_in_w

    pad_left = (k - 1) // 2                 # PyTorch padding='same', stride=1

    # Stacked weight: W2[o, kk*C_in + c] = w[o, c, kk]  (matches im2col rows).
    w2 = jnp.transpose(w, (0, 2, 1)).reshape(c_out, k * c_in).astype(compute_dtype)
    xc = x.astype(compute_dtype)
    itemsize = jnp.dtype(compute_dtype).itemsize

    b_tile = _pick_batch_tile(n, c_in, c_out, l, k, itemsize)
    nb = n // b_tile

    static = dict(k=k, l=l, c_in=c_in, b_tile=b_tile, pad_left=pad_left)
    rhs_scratch = pltpu.VMEM((k * c_in, b_tile * l), compute_dtype)

    # -------- Pass 1: conv + on-chip BN statistics (no conv to HBM) ---------
    mean_o, m2_o = pl.pallas_call(
        functools.partial(conv_stats_kernel, **static),
        grid=(nb,),
        in_specs=[
            pl.BlockSpec((b_tile, c_in, l), lambda b: (b, 0, 0)),   # x tile
            pl.BlockSpec((c_out, k * c_in), lambda b: (0, 0)),      # weights
        ],
        out_specs=(
            pl.BlockSpec((c_out, 1), lambda b: (0, 0)),             # mean acc
            pl.BlockSpec((c_out, 1), lambda b: (0, 0)),             # M2 acc
        ),
        out_shape=(
            jax.ShapeDtypeStruct((c_out, 1), jnp.float32),
            jax.ShapeDtypeStruct((c_out, 1), jnp.float32),
        ),
        scratch_shapes=[rhs_scratch],
        compiler_params=pltpu.CompilerParams(
            dimension_semantics=("arbitrary",),     # reduction axis (accumulator)
            vmem_limit_bytes=_VMEM_LIMIT,
        ),
    )(xc, w2)

    # -------- Fold BN batch stats + affine into per-channel scale/shift -----
    mean = mean_o[:, 0]
    var = m2_o[:, 0] / jnp.float32(n * l)           # biased variance (BN norm)
    scale = gamma * jax.lax.rsqrt(var + EPS)
    shift = beta - mean * scale

    # -------- Pass 2: recompute conv, fused BN + SiLU, single output store --
    out = pl.pallas_call(
        functools.partial(conv_bn_act_kernel, **static),
        grid=(nb,),
        in_specs=[
            pl.BlockSpec((b_tile, c_in, l), lambda b: (b, 0, 0)),   # x tile
            pl.BlockSpec((c_out, k * c_in), lambda b: (0, 0)),      # weights
            pl.BlockSpec((c_out, 1), lambda b: (0, 0)),             # scale
            pl.BlockSpec((c_out, 1), lambda b: (0, 0)),             # shift
        ],
        out_specs=pl.BlockSpec((b_tile, c_out, l), lambda b: (b, 0, 0)),
        out_shape=jax.ShapeDtypeStruct((n, c_out, l), jnp.float32),
        scratch_shapes=[rhs_scratch],
        compiler_params=pltpu.CompilerParams(
            dimension_semantics=("parallel",),      # shards across v7x's 2 TCs
            vmem_limit_bytes=_VMEM_LIMIT,
        ),
    )(xc, w2, scale.reshape(c_out, 1), shift.reshape(c_out, 1))
    return out


def local_block_ref(x, w, gamma, beta):
    """Pure-JAX reference mirroring the PyTorch forward (f32)."""
    conv = jax.lax.conv_general_dilated(
        x, w, window_strides=(1,), padding="SAME",
        dimension_numbers=("NCH", "OIH", "NCH"),
    )
    mean = conv.mean(axis=(0, 2), keepdims=True)
    var = ((conv - mean) ** 2).mean(axis=(0, 2), keepdims=True)
    y = gamma[None, :, None] * (conv - mean) / jnp.sqrt(var + EPS) + beta[None, :, None]
    return y * jax.nn.sigmoid(y)


if __name__ == "__main__":
    # Small shapes consistent with the module: N=2, in_ch=4, out_ch=8, L=16, ks=5.
    N, C_IN, C_OUT, L, KS = 2, 4, 8, 16, 5

    key = jax.random.PRNGKey(0)
    kx, kw, kg, kb = jax.random.split(key, 4)
    x = jax.random.normal(kx, (N, C_IN, L), dtype=jnp.float32)
    # Deterministic "Kaiming-ish" conv weight init; BN affine params random
    # (so BN is non-trivial) — synthetic parameters, not a checkpoint load.
    w = jax.random.normal(kw, (C_OUT, C_IN, KS), dtype=jnp.float32) * (1.0 / (C_IN * KS) ** 0.5)
    gamma = 1.0 + 0.1 * jax.random.normal(kg, (C_OUT,), dtype=jnp.float32)
    beta = 0.1 * jax.random.normal(kb, (C_OUT,), dtype=jnp.float32)

    ref = jax.block_until_ready(local_block_ref(x, w, gamma, beta))

    # f32 MXU inputs: tight check against the reference.
    out_f32 = jax.block_until_ready(
        local_block(x, w, gamma, beta, compute_dtype=jnp.float32))
    assert out_f32.shape == (N, C_OUT, L)
    assert jnp.allclose(out_f32, ref, atol=1e-4, rtol=1e-4), float(
        jnp.max(jnp.abs(out_f32 - ref)))

    # Default path (bf16 MXU inputs, f32 accumulation): looser tolerance.
    out_bf16 = jax.block_until_ready(local_block(x, w, gamma, beta))
    assert out_bf16.shape == (N, C_OUT, L)
    assert bool(jnp.all(jnp.isfinite(out_bf16)))
    assert jnp.allclose(out_bf16, ref, atol=2e-1, rtol=1e-1), float(
        jnp.max(jnp.abs(out_bf16 - ref)))

    print("KERNEL_OK")
</pallas_src>

<mosaic_0001>
module attributes {stable_mosaic.version = 11 : i64} {
  func.func @conv_stats_kernel(%arg0: i32, %arg1: memref<1x4x16xf32, #tpu.memory_space<vmem>>, %arg2: memref<8x20xf32, #tpu.memory_space<vmem>>, %arg3: memref<8x1xf32, #tpu.memory_space<vmem>>, %arg4: memref<8x1xf32, #tpu.memory_space<vmem>>, %arg5: memref<20x16xf32, #tpu.memory_space<vmem>>) attributes {dimension_semantics = [#tpu.dimension_semantics<arbitrary>], iteration_bounds = array<i64: 2>, scalar_prefetch = 0 : i64, scratch_operands = 1 : i64, tpu.core_type = #tpu.core_type<tc>, window_params = [{transform_indices = @transform_0, window_bounds = array<i64: 1, 4, 16>}, {pipeline_mode = #tpu.pipeline_mode<synchronous>, transform_indices = @transform_1, window_bounds = array<i64: 8, 20>}, {pipeline_mode = #tpu.pipeline_mode<synchronous>, transform_indices = @transform_2, window_bounds = array<i64: 8, 1>}, {pipeline_mode = #tpu.pipeline_mode<synchronous>, transform_indices = @transform_3, window_bounds = array<i64: 8, 1>}]} {
    %c0_i32 = arith.constant 0 : i32
    %0 = arith.cmpi eq, %arg0, %c0_i32 : i32
    %1 = arith.extui %0 : i1 to i32
    %c0_i32_0 = arith.constant 0 : i32
    %2 = arith.cmpi ne, %1, %c0_i32_0 : i32
    scf.if %2 {
      %cst_50 = arith.constant 0.000000e+00 : f32
      %58 = vector.broadcast %cst_50 : f32 to vector<8x1xf32>
      %c0_51 = arith.constant 0 : index
      %c0_52 = arith.constant 0 : index
      %59 = vector.load %arg3[%c0_51, %c0_52] : memref<8x1xf32, #tpu.memory_space<vmem>>, vector<8x1xf32>
      tpu.vector_store %arg3[%c0_51, %c0_52], %58 {strides = array<i32>} : memref<8x1xf32, #tpu.memory_space<vmem>>, vector<8x1xf32>,
      %cst_53 = arith.constant 0.000000e+00 : f32
      %60 = vector.broadcast %cst_53 : f32 to vector<8x1xf32>
      %c0_54 = arith.constant 0 : index
      %c0_55 = arith.constant 0 : index
      %61 = vector.load %arg4[%c0_54, %c0_55] : memref<8x1xf32, #tpu.memory_space<vmem>>, vector<8x1xf32>
      tpu.vector_store %arg4[%c0_54, %c0_55], %60 {strides = array<i32>} : memref<8x1xf32, #tpu.memory_space<vmem>>, vector<8x1xf32>,
    } else {
    }
    %c0 = arith.constant 0 : index
    %c0_1 = arith.constant 0 : index
    %c0_2 = arith.constant 0 : index
    %3 = vector.load %arg1[%c0, %c0_1, %c0_2] : memref<1x4x16xf32, #tpu.memory_space<vmem>>, vector<1x4x14xf32>
    %4 = vector.shape_cast %3 : vector<1x4x14xf32> to vector<4x14xf32>
    %c0_3 = arith.constant 0 : index
    %c2 = arith.constant 2 : index
    %5 = vector.load %arg5[%c0_3, %c2] : memref<20x16xf32, #tpu.memory_space<vmem>>, vector<4x14xf32>
    tpu.vector_store %arg5[%c0_3, %c2], %4 {strides = array<i32>} : memref<20x16xf32, #tpu.memory_space<vmem>>, vector<4x14xf32>,
    %cst = arith.constant 0.000000e+00 : f32
    %6 = vector.broadcast %cst : f32 to vector<4x2xf32>
    %c0_4 = arith.constant 0 : index
    %c0_5 = arith.constant 0 : index
    %7 = vector.load %arg5[%c0_4, %c0_5] : memref<20x16xf32, #tpu.memory_space<vmem>>, vector<4x2xf32>
    tpu.vector_store %arg5[%c0_4, %c0_5], %6 {strides = array<i32>} : memref<20x16xf32, #tpu.memory_space<vmem>>, vector<4x2xf32>,
    %c0_6 = arith.constant 0 : index
    %c0_7 = arith.constant 0 : index
    %c0_8 = arith.constant 0 : index
    %8 = vector.load %arg1[%c0_6, %c0_7, %c0_8] : memref<1x4x16xf32, #tpu.memory_space<vmem>>, vector<1x4x15xf32>
    %9 = vector.shape_cast %8 : vector<1x4x15xf32> to vector<4x15xf32>
    %c4 = arith.constant 4 : index
    %c1 = arith.constant 1 : index
    %10 = vector.load %arg5[%c4, %c1] : memref<20x16xf32, #tpu.memory_space<vmem>>, vector<4x15xf32>
    tpu.vector_store %arg5[%c4, %c1], %9 {strides = array<i32>} : memref<20x16xf32, #tpu.memory_space<vmem>>, vector<4x15xf32>,
    %cst_9 = arith.constant 0.000000e+00 : f32
    %11 = vector.broadcast %cst_9 : f32 to vector<4x1xf32>
    %c4_10 = arith.constant 4 : index
    %c0_11 = arith.constant 0 : index
    %12 = vector.load %arg5[%c4_10, %c0_11] : memref<20x16xf32, #tpu.memory_space<vmem>>, vector<4x1xf32>
    tpu.vector_store %arg5[%c4_10, %c0_11], %11 {strides = array<i32>} : memref<20x16xf32, #tpu.memory_space<vmem>>, vector<4x1xf32>,
    %c0_12 = arith.constant 0 : index
    %c0_13 = arith.constant 0 : index
    %c0_14 = arith.constant 0 : index
    %13 = vector.load %arg1[%c0_12, %c0_13, %c0_14] : memref<1x4x16xf32, #tpu.memory_space<vmem>>, vector<1x4x16xf32>
    %14 = vector.shape_cast %13 : vector<1x4x16xf32> to vector<4x16xf32>
    %c8 = arith.constant 8 : index
    %c0_15 = arith.constant 0 : index
    %15 = vector.load %arg5[%c8, %c0_15] : memref<20x16xf32, #tpu.memory_space<vmem>>, vector<4x16xf32>
    tpu.vector_store %arg5[%c8, %c0_15], %14 {strides = array<i32>} : memref<20x16xf32, #tpu.memory_space<vmem>>, vector<4x16xf32>,
    %c0_16 = arith.constant 0 : index
    %c0_17 = arith.constant 0 : index
    %c1_18 = arith.constant 1 : index
    %16 = vector.load %arg1[%c0_16, %c0_17, %c1_18] : memref<1x4x16xf32, #tpu.memory_space<vmem>>, vector<1x4x15xf32>
    %17 = vector.shape_cast %16 : vector<1x4x15xf32> to vector<4x15xf32>
    %c12 = arith.constant 12 : index
    %c0_19 = arith.constant 0 : index
    %18 = vector.load %arg5[%c12, %c0_19] : memref<20x16xf32, #tpu.memory_space<vmem>>, vector<4x15xf32>
    tpu.vector_store %arg5[%c12, %c0_19], %17 {strides = array<i32>} : memref<20x16xf32, #tpu.memory_space<vmem>>, vector<4x15xf32>,
    %cst_20 = arith.constant 0.000000e+00 : f32
    %19 = vector.broadcast %cst_20 : f32 to vector<4x1xf32>
    %c12_21 = arith.constant 12 : index
    %c15 = arith.constant 15 : index
    %20 = vector.load %arg5[%c12_21, %c15] : memref<20x16xf32, #tpu.memory_space<vmem>>, vector<4x1xf32>
    tpu.vector_store %arg5[%c12_21, %c15], %19 {strides = array<i32>} : memref<20x16xf32, #tpu.memory_space<vmem>>, vector<4x1xf32>,
    %c0_22 = arith.constant 0 : index
    %c0_23 = arith.constant 0 : index
    %c2_24 = arith.constant 2 : index
    %21 = vector.load %arg1[%c0_22, %c0_23, %c2_24] : memref<1x4x16xf32, #tpu.memory_space<vmem>>, vector<1x4x14xf32>
    %22 = vector.shape_cast %21 : vector<1x4x14xf32> to vector<4x14xf32>
    %c16 = arith.constant 16 : index
    %c0_25 = arith.constant 0 : index
    %23 = vector.load %arg5[%c16, %c0_25] : memref<20x16xf32, #tpu.memory_space<vmem>>, vector<4x14xf32>
    tpu.vector_store %arg5[%c16, %c0_25], %22 {strides = array<i32>} : memref<20x16xf32, #tpu.memory_space<vmem>>, vector<4x14xf32>,
    %cst_26 = arith.constant 0.000000e+00 : f32
    %24 = vector.broadcast %cst_26 : f32 to vector<4x2xf32>
    %c16_27 = arith.constant 16 : index
    %c14 = arith.constant 14 : index
    %25 = vector.load %arg5[%c16_27, %c14] : memref<20x16xf32, #tpu.memory_space<vmem>>, vector<4x2xf32>
    tpu.vector_store %arg5[%c16_27, %c14], %24 {strides = array<i32>} : memref<20x16xf32, #tpu.memory_space<vmem>>, vector<4x2xf32>,
    %c0_28 = arith.constant 0 : index
    %c0_29 = arith.constant 0 : index
    %26 = vector.load %arg2[%c0_28, %c0_29] : memref<8x20xf32, #tpu.memory_space<vmem>>, vector<8x20xf32>
    %c0_30 = arith.constant 0 : index
    %c0_31 = arith.constant 0 : index
    %27 = vector.load %arg5[%c0_30, %c0_31] : memref<20x16xf32, #tpu.memory_space<vmem>>, vector<20x16xf32>
    %cst_32 = arith.constant dense<0.000000e+00> : vector<8x16xf32>
    %28 = tpu.matmul %26, %27, %cst_32 {dimension_numbers = #tpu.dot_dimension_numbers<[1], [0], [0], [1], [0, 0, 1, 1], [], []>} : vector<8x20xf32>, vector<20x16xf32>, vector<8x16xf32> -> vector<8x16xf32>
    %cst_33 = arith.constant dense<0.000000e+00> : vector<8xf32>
    %29 = vector.multi_reduction <add>, %28, %cst_33 [1] : vector<8x16xf32> to vector<8xf32>
    %30 = vector.shape_cast %29 : vector<8xf32> to vector<8x1xf32>
    %cst_34 = arith.constant 6.250000e-02 : f32
    %31 = vector.broadcast %cst_34 : f32 to vector<8x1xf32>
    %32 = arith.mulf %30, %31 : vector<8x1xf32>
    %33 = vector.broadcast %32 : vector<8x1xf32> to vector<8x16xf32>
    %34 = arith.subf %28, %33 : vector<8x16xf32>
    %35 = arith.mulf %34, %34 : vector<8x16xf32>
    %cst_35 = arith.constant dense<0.000000e+00> : vector<8xf32>
    %36 = vector.multi_reduction <add>, %35, %cst_35 [1] : vector<8x16xf32> to vector<8xf32>
    %37 = vector.shape_cast %36 : vector<8xf32> to vector<8x1xf32>
    %38 = arith.sitofp %arg0 : i32 to f32
    %cst_36 = arith.constant 1.600000e+01 : f32
    %39 = arith.mulf %38, %cst_36 : f32
    %cst_37 = arith.constant 1.600000e+01 : f32
    %40 = arith.addf %39, %cst_37 : f32
    %c0_38 = arith.constant 0 : index
    %c0_39 = arith.constant 0 : index
    %41 = vector.load %arg3[%c0_38, %c0_39] : memref<8x1xf32, #tpu.memory_space<vmem>>, vector<8x1xf32>
    %42 = arith.subf %32, %41 : vector<8x1xf32>
    %c0_40 = arith.constant 0 : index
    %c0_41 = arith.constant 0 : index
    %43 = vector.load %arg3[%c0_40, %c0_41] : memref<8x1xf32, #tpu.memory_space<vmem>>, vector<8x1xf32>
    %cst_42 = arith.constant 1.600000e+01 : f32
    %44 = arith.divf %cst_42, %40 : f32
    %45 = vector.broadcast %44 : f32 to vector<8x1xf32>
    %46 = arith.mulf %42, %45 : vector<8x1xf32>
    %47 = arith.addf %43, %46 : vector<8x1xf32>
    %c0_43 = arith.constant 0 : index
    %c0_44 = arith.constant 0 : index
    %48 = vector.load %arg3[%c0_43, %c0_44] : memref<8x1xf32, #tpu.memory_space<vmem>>, vector<8x1xf32>
    tpu.vector_store %arg3[%c0_43, %c0_44], %47 {strides = array<i32>} : memref<8x1xf32, #tpu.memory_space<vmem>>, vector<8x1xf32>,
    %c0_45 = arith.constant 0 : index
    %c0_46 = arith.constant 0 : index
    %49 = vector.load %arg4[%c0_45, %c0_46] : memref<8x1xf32, #tpu.memory_space<vmem>>, vector<8x1xf32>
    %50 = arith.addf %49, %37 : vector<8x1xf32>
    %51 = arith.mulf %42, %42 : vector<8x1xf32>
    %cst_47 = arith.constant 1.600000e+01 : f32
    %52 = arith.mulf %39, %cst_47 : f32
    %53 = arith.divf %52, %40 : f32
    %54 = vector.broadcast %53 : f32 to vector<8x1xf32>
    %55 = arith.mulf %51, %54 : vector<8x1xf32>
    %56 = arith.addf %50, %55 : vector<8x1xf32>
    %c0_48 = arith.constant 0 : index
    %c0_49 = arith.constant 0 : index
    %57 = vector.load %arg4[%c0_48, %c0_49] : memref<8x1xf32, #tpu.memory_space<vmem>>, vector<8x1xf32>
    tpu.vector_store %arg4[%c0_48, %c0_49], %56 {strides = array<i32>} : memref<8x1xf32, #tpu.memory_space<vmem>>, vector<8x1xf32>,
    return
  }
  func.func @transform_0(%arg0: i32) -> (i32, i32, i32) {
    %c0_i32 = arith.constant 0 : i32
    %c0_i32_0 = arith.constant 0 : i32
    %c0_i32_1 = arith.constant 0 : i32
    return %arg0, %c0_i32, %c0_i32_0 : i32, i32, i32
  }
  func.func @transform_1(%arg0: i32) -> (i32, i32) {
    %c0_i32 = arith.constant 0 : i32
    %c0_i32_0 = arith.constant 0 : i32
    %c0_i32_1 = arith.constant 0 : i32
    return %c0_i32, %c0_i32_0 : i32, i32
  }
  func.func @transform_2(%arg0: i32) -> (i32, i32) {
    %c0_i32 = arith.constant 0 : i32
    %c0_i32_0 = arith.constant 0 : i32
    %c0_i32_1 = arith.constant 0 : i32
    return %c0_i32, %c0_i32_0 : i32, i32
  }
  func.func @transform_3(%arg0: i32) -> (i32, i32) {
    %c0_i32 = arith.constant 0 : i32
    %c0_i32_0 = arith.constant 0 : i32
    %c0_i32_1 = arith.constant 0 : i32
    return %c0_i32, %c0_i32_0 : i32, i32
  }
}

</mosaic_0001>

<bundles_post_ra>
// kernel: tpu_custom_call.1
= control target key start
LH: loop header
LB: loop body
LE: loop exit
PB: predicated region body
PF: predicated region fallthrough
CT: control target
= control target key end

     0   :  { %9 = vsyncpa [#allocation4], 0  ;;  %s790_s0 = inlined_call_operand.hbm [shape: f32[2,4,16], index: 0, kind: input, shape index: {}]   ;;  %s791_s1 = inlined_call_operand.hbm [shape: f32[8,20], index: 1, kind: input, shape index: {}]   ;;  %s792_s2 = inlined_call_operand.vmem [shape: f32[8,1], index: 2, kind: output, shape index: {0}]   ;;  %s793_s3 = inlined_call_operand.vmem [shape: f32[8,1], index: 3, kind: output, shape index: {1}]  }
   0x1   :  { %11 = vsyncpa [#allocation4 + $0x1], 0 }
   0x2   :  { %12 = vsyncpa [#allocation6], 0  ;;  %s623_s12 = smov 0   ;;  %s625_s13 = smov 0  }
   0x3   :  { %s627_s14 = smov 0   ;;  %s629_s15 = smov 0  }
   0x4 LB: > { %s642_s16 = sadd.s32 4294967295, %s591_s15   ;;  %p38_p0 = scmp.ne.s32.totalorder %s583_s13, %s579_s12  ;;  %s591_s15 = sphi %s629_s15, %s812_s15   ;;  %s587_s14 = sphi %s627_s14, %s811_s14   ;;  %s583_s13 = sphi %s625_s13, %s810_s13   ;;  %s579_s12 = sphi %s623_s12, %s809_s12  }
   0x5   : > { %p794_p1 = scmp.eq.s32.totalorder %s642_s16, 0  ;;  %p404_p2 = scmp.ge.s32.totalorder %s591_s15, 1 }
   0x6   : > { %p112_p3 = scmp.lt.s32.totalorder %s591_s15, 3  ;;  %s593_s19 = smov [#allocation5]  }
   0x7   : > { %p651_p5 = por %p794_p1, %p38_p0  ;;  %s125_s20 = sshll.u32 %s593_s19, 4  ;;  %s126_s20 = int_to_ptr.vmem [resolvable:$true] %s125_s20 }
   0x8   : > { %p655_p6 = pnand %p404_p2, %p112_p3  ;;  %s662_s21 = sadd.s32 1, %s591_s15  }
   0x9   : > { %s797_s17 = scalar_select %p651_p5, 1, 0 }
   0xa   : > { %s798_s18 = scalar_select %p655_p6, 1, 0 }
   0xb   : > { %p441_p7 = pneg %p655_p6  ;;  %s22_s23 = ssub.s32 %s591_s15, %s662_s21 }
   0xc   : > { %p672_p9 = scmp.eq.s32.totalorder %s22_s23, 0  ;;  %s25_s25 = sadd.s32 1, %s587_s14 }
   0xd   : > { %p666_p8 = pnand %p441_p7, %p794_p1  ;;  %s495_s28 = scalar_lea.hbm %s791_s1, 128 }
   0xe   : > { %s800_s24 = scalar_select %p672_p9, 1, 0 }
   0xf   : > { %p496_p11 = scmp.ne.s32.totalorder %s791_s1, %s495_s28  ;;  %p497_p12 = pneg %p666_p8 }
  0x10   : > { %p502_p2 = scmp.lt.u32.totalorder %s495_s28, %s791_s1 }
  0x11   : > { %p498_p13 = pnand %p497_p12, %p496_p11 }
  0x13   : > { %p499_p0 = pneg %p498_p13 }
  0x15   : > { %p504_p3 = pnand %p502_p2, %p499_p0 }
  0x17   : > { %507 = shalt.err (!%p504_p3)
}
  0x18   : > { %s508_s6 = scalar_lea.vmem %s126_s20, 128  ;;  %p516_p10 = scmp.lt.s32.totalorder %s126_s20, %s126_s20 }
  0x19   : > { %p509_p7 = scmp.ne.s32.totalorder %s126_s20, %s508_s6  ;;  %p517_p5 = scmp.lt.s32.totalorder %s508_s6, %s508_s6 }
  0x1b   : > { %p511_p4 = pnand %p509_p7, %p497_p12  ;;  %p518_p6 = por %p517_p5, %p516_p10 }
  0x1d   : > { %p512_p1 = pneg %p511_p4 }
  0x1f   : > { %p519_p9 = pnand %p518_p6, %p512_p1 }
  0x21   : > { %522 = shalt.err (!%p519_p9)
}
  0x22   : > { %444 = dma.hbm_to_vmem [thread:$0]  (!%p666_p8), %s791_s1, 128, %s126_s20, [#allocation6]  }
  0x23   : > { %p801_p4 = scmp.ne.s32.totalorder %s800_s24, 0  ;;  %p33_p5 = scmp.eq.s32.totalorder %s591_s15, 0 }
  0x24   : > { %p450_p1 = scmp.lt.s32.totalorder %s591_s15, 2  ;;  %s136_s10 = sand.u32 1, %s587_s14  }
  0x25   : > { %s698_s9 = scalar_select %p801_p4, %s587_s14, %s25_s25  }
  0x26   : > { %s408_s11 = sshll.u32 %s591_s15, 6  ;;  %p802_p6 = scmp.ne.s32.totalorder %s587_s14, %s583_s13 }
  0x27   : > { %s407_s12 = sshll.u32 %s136_s10, 2  ;;  %s710_s23 = scalar_lea.hbm %s790_s0, %s408_s11 }
  0x28   : > { %p34_p9 = por %p33_p5, %p802_p6  ;;  %s140_s24 = scalar_lea.vmem [#allocation3], %s407_s12 }
  0x29   : > { %s147_s15 = sshll.u32 %s140_s24, 4  ;;  %s137_s25 = scalar_lea.sflag [#allocation4], %s136_s10  ;;  %s716_s15 = int_to_ptr.vmem [resolvable:$true] %s147_s15 }
  0x2a   : > { %p712_p8 = pnand %p450_p1, %p34_p9  ;;  %s523_s26 = scalar_lea.hbm %s710_s23, 64 }
  0x2b   : > { %p524_p10 = scmp.ne.s32.totalorder %s710_s23, %s523_s26  ;;  %s528_s29 = scalar_lea.hbm %s790_s0, 128 }
  0x2c   : > { %p525_p11 = pneg %p712_p8  ;;  %p529_p0 = scmp.lt.u32.totalorder %s710_s23, %s790_s0 }
  0x2d   : > { %p530_p2 = scmp.lt.u32.totalorder %s528_s29, %s523_s26  ;;  %p532_p7 = scmp.lt.u32.totalorder %s523_s26, %s710_s23 }
  0x2e   : > { %p526_p12 = pnand %p525_p11, %p524_p10 }
  0x2f   : > { %p531_p3 = por %p530_p2, %p529_p0 }
  0x30   : > { %p527_p13 = pneg %p526_p12 }
  0x31   : > { %p533_p4 = por %p532_p7, %p531_p3 }
  0x33   : > { %p534_p5 = pnand %p533_p4, %p527_p13 }
  0x35   : > { %537 = shalt.err (!%p534_p5)
}
  0x36   : > { %s538_s5 = scalar_lea.vmem %s716_s15, 64  ;;  %s594_s6 = smov [#allocation3]  }
  0x37   : > { %p539_p1 = scmp.ne.s32.totalorder %s716_s15, %s538_s5  ;;  %s543_s7 = sshll.u32 %s594_s6, 4  ;;  %s544_s7 = int_to_ptr.vmem [resolvable:$false] %s543_s7 }
  0x38   : > { %s545_s8 = scalar_lea.vmem %s544_s7, 128  ;;  %p546_p10 = scmp.lt.s32.totalorder %s716_s15, %s544_s7 }
  0x39   : > { %p541_p6 = pnand %p539_p1, %p525_p11  ;;  %p547_p12 = scmp.lt.s32.totalorder %s545_s8, %s538_s5 }
  0x3b   : > { %p542_p9 = pneg %p541_p6  ;;  %p548_p0 = por %p547_p12, %p546_p10 }
  0x3d   : > { %p549_p2 = pnand %p548_p0, %p542_p9 }
  0x3f   : > { %552 = shalt.err (!%p549_p2)
}
  0x40   : > { %448 = dma.hbm_to_vmem [thread:$0]  (!%p712_p8), %s710_s23, 64, %s716_s15, %s137_s25  }
  0x41   : > { %p804_p13 = scmp.ne.s32.totalorder %s798_s18, 0 }
  0x42   : > { %s158_s10 = sand.u32 (!%p804_p13), 1, %s583_s13   ;;  %p805_p11 = scmp.ne.s32.totalorder (!%p804_p13), %s797_s17, 0 }
  0x43   : > { %156 = sbr.rel (%p804_p13) target bundleno = 733 (0x2dd), region = 28  ;;  %s410_s11 = sshll.u32 (!%p804_p13), %s158_s10, 2 }
  0x44   : > { %s159_s12 = scalar_lea.sflag (!%p804_p13), [#allocation4], %s158_s10  ;;  %s162_s19 = scalar_lea.vmem (!%p804_p13), [#allocation3], %s410_s11 }
  0x4a   : > { %570 = dma.done.wait (%p805_p11), %s159_s12, 64  }
  0x4b   : > { %572 = vsyncadd (%p805_p11), %s159_s12, 4294967232  ;;  %p806_p3 = scmp.eq.s32.totalorder %s642_s16, 0 }
  0x4d   : > { %574 = dma.done.wait (%p806_p3), [#allocation6], 128   ;;  %p807_p7 = pmov %p806_p3 }
  0x4e   : > { %p808_p8 = scmp.ne.s32.totalorder %s642_s16, 0 }
  0x4f   : > { %576 = vsyncadd (%p807_p7), [#allocation6], 4294967168  ;;  %vm188_vm0 = vcmask (!%p808_p8), 7168   ;;  %v595_v0 = vmov (!%p808_p8), 0.0  }
  0x50   : > { %187 = sbr.rel (%p808_p8) target bundleno = 87 (0x57), region = 40  ;;  %189 = vst.msk [vmem:[%s792_s2] sm:$0xff] (!%p808_p8), %vm188_vm0, %v595_v0  ;;  %190 = vst.msk [vmem:[%s793_s3] sm:$0xff] (!%p808_p8), %vm188_vm0, %v595_v0 }
  0x57 PF: > { %v191_v1 = vld [vmem:[%s162_s19] sm:$0xf]  ;;  %s596_s17 = smov 2   ;;  %s597_s24 = smov 127   ;;  %vm210_vm1 = vcmask 125952   ;;  %v600_v6 = vmov 0.0|0.0  }
  0x58   : > { %v212_v2 = vld [vmem:[%s162_s19] sm:$0xf]  ;;  %193 = vrot.lane.b32.xlu0 %v191_v1, %s596_s17  ;;  %s598_s15 = smov 1   ;;  %s599_s25 = smov 126   ;;  %430 = vmatprep.subr.bf16.mxu0 %v600_v6  ;;  %vm601_vm2 = vmmov 0   ;;  %v602_v7 = vmov 0.0  }
  0x59   : > { %214 = vrot.lane.b32.xlu1 %v212_v2, %s597_s24  ;;  %v200_v3 = vld [vmem:[%s162_s19] sm:$0xf]  ;;  %427 = vmatprep.mubr.msk.f32.mxu0 %vm601_vm2, %v602_v7  ;;  %vm196_vm3 = vcmask 125968   ;;  %vm217_vm4 = vcmask 117760   ;;  %vm198_vm5 = vcmask 11264   ;;  %vm219_vm6 = vcmask 126072   ;;  %s322_s26 = scvt.s32.f32 %s642_s16 }
  0x5a   : > { %v221_v4 = vld [vmem:[%s162_s19] sm:$0xf]  ;;  %vm205_vm7 = vcmask 125960   ;;  %vm226_vm8 = vcmask 109568   ;;  %vm207_vm9 = vcmask 3072   ;;  %vm228_vm10 = vcmask 126064  }
  0x5b   : > { %v209_v5 = vld [vmem:[%s162_s19] sm:$0xf]  ;;  %vm238_vm11 = vcmask 1043456   ;;  %v230_v16 = vld [vmem:[#allocation5] sm:$0xff]  ;;  %vm234_vm12 = vcmask 162816   ;;  %s323_s27 = smul.f32 16.0, %s322_s26 }
  0x5c   : > { %202 = vrot.lane.b32.xlu0 %v200_v3, %s598_s15  ;;  %211 = vst.msk [vmem:[#allocation2 + $0x8] sm:$0xf] %vm210_vm1, %v209_v5  ;;  %vm312_vm13 = vcmask 130048   ;;  %v325_v22 = vld [vmem:[%s792_s2] sm:$0xff]  ;;  %vm334_vm14 = vcmask 7168  }
  0x5d   : > { %223 = vrot.lane.b32.xlu1 %v221_v4, %s599_s25  ;;  %s324_s28 = sadd.f32 16.0, %s323_s27  ;;  %s339_s30 = smul.f32 16.0, %s323_s27  ;;  %v336_v35 = vld [vmem:[%s793_s3] sm:$0xff] }
  0x5f   : > { %v327_v17 = vstv %s324_s28 }
  0x60   : > { %493 = vrcp.f32 %v327_v17 }
  0x6a   : > { %v494_v18 = vpop.eup %493 }
  0x6b   : > { %433 = vpush %v494_v18 }
  0x9c   : > { %s434_s29 = spop %433 }
  0x9d   : > { %s330_s4 = smul.f32 16.0, %s434_s29 }
  0x9e   : > { %s343_s16 = smul.f32 %s434_s29, %s339_s30 }
  0x9f   : > { %v331_v25 = vstv %s330_s4 }
  0xa0   : > { %v344_v28 = vstv %s343_s16 }
  0xca   : > { %v194_v8 = vpop.permute.xlu0 %193 }
  0xcb   : > { %v215_v9 = vpop.permute.xlu1 %214  ;;  %197 = vst.msk [vmem:[#allocation2] sm:$0xf] %vm196_vm3, %v194_v8 }
  0xcc   : > { %218 = vst.msk [vmem:[#allocation2 + $0xc] sm:$0xf] %vm217_vm4, %v215_v9 }
  0xcd   : > { %199 = vst.msk [vmem:[#allocation2] sm:$0xf] %vm198_vm5, %v602_v7 }
  0xce   : > { %220 = vst.msk [vmem:[#allocation2 + $0xc] sm:$0xf] %vm219_vm6, %v602_v7  ;;  %v203_v10 = vpop.permute.xlu0 %202 }
  0xcf   : > { %v224_v11 = vpop.permute.xlu1 %223  ;;  %206 = vst.msk [vmem:[#allocation2 + $0x4] sm:$0xf] %vm205_vm7, %v203_v10 }
  0xd0   : > { %227 = vst.msk [vmem:[#allocation2 + $0x10] sm:$0xf] %vm226_vm8, %v224_v11 }
  0xd1   : > { %208 = vst.msk [vmem:[#allocation2 + $0x4] sm:$0xf] %vm207_vm9, %v602_v7 }
  0xd2   : > { %229 = vst.msk [vmem:[#allocation2 + $0x10] sm:$0xf] %vm228_vm10, %v602_v7 }
  0xd5   : > { %v232_v12 = vld [vmem:[#allocation2 + $0x8] sm:$0xff] }
  0xd8   : > { %v231_v13 = vld [vmem:[#allocation2] sm:$0xff] }
  0xd9   : > { %v431_v14 = vpack.c.bf16 %v232_v12, %v231_v13  ;;  %v233_v15 = vld [vmem:[#allocation2 + $0x10] sm:$0xf] }
  0xdb   : > { %432 = vmatpush3.bf16.msra.mxu0 %v431_v14 }
  0xdc   : > { %425 = vmatprep.subr.mxu0 %v602_v7 }
  0xdf   : > { %426 = vmatpush3.msk.msra.mxu0 %vm238_vm11, %v233_v15 }
  0xe0   : > { %428 = vmatmul.mubr.msk.f32.vlgmr.msra.gmra.mrb[0].mxu0 %vm234_vm12, %v230_v16 }
 0x1b3   : > { %v308_v19 = vpop.f32.mrb[0].mxu0 }
 0x1b4   : > { %v429_v20 = vpop.f32.mrb[1].mxu0  ;;  %v313_v21 = vsel %vm312_vm13, %v308_v19, 0.0 }
 0x1b5   : > { %314 = vadd.xlane.f32.xlu0 %v313_v21 }
 0x242   : > { %v315_v23 = vpop.xlane.xlu0 %314 }
 0x243   : > { %v316_v24 = vmul.f32 0.0625, %v315_v23 }
 0x245   : > { %v317_v26 = vsub.f32 %v308_v19, %v316_v24  ;;  %v326_v27 = vsub.f32 %v316_v24, %v325_v22 }
 0x247   : > { %v318_v29 = vmul.f32 %v317_v26, %v317_v26  ;;  %v338_v30 = vmul.f32 %v326_v27, %v326_v27  ;;  %v332_v31 = vmul.f32 %v331_v25, %v326_v27 }
 0x249   : > { %v333_v32 = vadd.f32 %v332_v31, %v325_v22  ;;  %v345_v33 = vmul.f32 %v344_v28, %v338_v30  ;;  %v319_v34 = vsel %vm312_vm13, %v318_v29, 0.0 }
 0x24a   : > { %320 = vadd.xlane.f32.xlu1 %v319_v34 }
 0x24b   : > { %335 = vst.msk [vmem:[%s792_s2] sm:$0xff] %vm334_vm14, %v333_v32 }
 0x2d7   : > { %v321_v36 = vpop.xlane.xlu1 %320 }
 0x2d8   : > { %v337_v37 = vadd.f32 %v336_v35, %v321_v36 }
 0x2da   : > { %v346_v38 = vadd.f32 %v345_v33, %v337_v37 }
 0x2dc   : > { %347 = vst.msk [vmem:[%s793_s3] sm:$0xff] %vm334_vm14, %v346_v38 }
 0x2dd PF: > { %p15_p4 = scmp.ge.s32.totalorder %s662_s21, 4   ;;  %s809_s12 = smov %s583_s13 }
 0x2de   : > { %s810_s13 = smov %s587_s14  ;;  %s811_s14 = smov %s698_s9 }
 0x2df   : > { %s812_s15 = smov %s662_s21  ;;  %17 = sbr.rel (!%p15_p4) target bundleno = 4 (0x4), region = 80 }
 0x2e6   :  { %365 = vsyncpa [#allocation4], 1 }
 0x2e7   :  { %367 = vsyncpa [#allocation4 + $0x1], 1 }
 0x2e8   :  { %368 = vsyncpa [#allocation6], 1 }

</bundles_post_ra>
